<compile_context>
chip_gen: v7x
topology: tpu7x:2x2x1
jax: 0.10.0
libtpu: 0.0.40
codegen_flags: <defaults>
</compile_context>

<pallas_src>
import functools

import jax
import jax.numpy as jnp
from jax.experimental import pallas as pl
from jax.experimental.pallas import tpu as pltpu


def channel_attention_kernel(x_ref, w1t_ref, w2t_ref, o_ref, *, hw_valid):
    # x_ref:  (bt, C, HWp)  HWp multiple of 128 (or == HW if already dense)
    # w1t_ref: (C, Ch)  transposed first Linear weight, f32
    # w2t_ref: (Ch, C)  transposed second Linear weight, f32
    hwp = x_ref.shape[-1]

    # ---- spatial pooling (f32 accumulation) ----
    xf = x_ref[...].astype(jnp.float32)                       # (bt, C, HWp)
    avg = jnp.sum(xf, axis=-1) * jnp.float32(1.0 / hw_valid)  # (bt, C)
    if hw_valid != hwp:
        lane = jax.lax.broadcasted_iota(jnp.int32, xf.shape, 2)
        xf = jnp.where(lane < hw_valid, xf, -jnp.inf)
    mx = jnp.max(xf, axis=-1)                                  # (bt, C)

    # ---- shared MLP: two tiny matmul pairs (no sublane concat) ----
    w1t = w1t_ref[...]
    w2t = w2t_ref[...]

    def mlp(v):
        h = jnp.maximum(jnp.dot(v, w1t, preferred_element_type=jnp.float32), 0.0)
        return jnp.dot(h, w2t, preferred_element_type=jnp.float32)

    scale = jax.nn.sigmoid(mlp(avg) + mlp(mx))                 # (bt, C) f32

    # ---- apply: re-read x_ref so the slab is not kept live across the MLP ----
    o_ref[...] = x_ref[...] * scale[:, :, None].astype(o_ref.dtype)


def _round_up(n, m):
    return ((n + m - 1) // m) * m


def _vmem_capacity_bytes():
    try:
        return int(pltpu.get_tpu_info().vmem_capacity_bytes)
    except Exception:
        return 64 << 20  # conservative fallback (v7x per-TensorCore VMEM)


def _choose_batch_tile(B, per_batch_bytes, slab_budget_bytes, min_steps=4):
    """Largest bt that (a) fits the slab budget, (b) divides B, and
    (c) leaves at least min(min_steps, B) grid steps for pipelining/megacore."""
    max_bt = max(1, slab_budget_bytes // max(1, per_batch_bytes))
    max_bt = min(max_bt, max(1, B // min(min_steps, B)))
    max_bt = min(max_bt, B)
    for bt in range(int(max_bt), 0, -1):
        if B % bt == 0:
            return bt
    return 1


def channel_attention(x, w1, w2, *, slab_budget_bytes=None):
    """x: (B, C, H, W); w1: (C//r, C); w2: (C, C//r)  (PyTorch Linear layout)."""
    B, C, H, W = x.shape
    HW = H * W
    HWp = _round_up(HW, 128)
    Ch = w1.shape[0]
    itemsize = x.dtype.itemsize

    vmem_cap = _vmem_capacity_bytes()
    if slab_budget_bytes is None:
        # ~16 MiB per step on v5e/v6e (128 MiB VMEM), ~8 MiB on v7x (64 MiB).
        slab_budget_bytes = vmem_cap // 8

    x3 = x.reshape(B, C, HW)
    if HWp != HW:
        # Lane-dense padding: one extra pad/slice pass in XLA, but every store
        # inside the kernel becomes an unmasked 128-lane vst.
        x3 = jnp.pad(x3, ((0, 0), (0, 0), (0, HWp - HW)))

    w1t = jnp.asarray(w1, jnp.float32).T  # (C, Ch)
    w2t = jnp.asarray(w2, jnp.float32).T  # (Ch, C)

    per_batch_bytes = C * HWp * itemsize
    bt = _choose_batch_tile(B, per_batch_bytes, slab_budget_bytes)
    grid = (B // bt,)

    # Double-buffered input + output slabs, double-buffered weights, headroom;
    # clamped well below the physical per-core VMEM of this generation.
    slab_bytes = bt * per_batch_bytes
    weight_bytes = 4 * C * Ch * 4
    want = 4 * slab_bytes + weight_bytes + (4 << 20)
    vmem_limit = int(min(int(vmem_cap * 0.75), max(want, 32 << 20)))

    kernel = functools.partial(channel_attention_kernel, hw_valid=HW)
    out3 = pl.pallas_call(
        kernel,
        out_shape=jax.ShapeDtypeStruct((B, C, HWp), x.dtype),
        grid_spec=pltpu.PrefetchScalarGridSpec(
            num_scalar_prefetch=0,
            grid=grid,
            in_specs=[
                pl.BlockSpec((bt, C, HWp), lambda b: (b, 0, 0)),
                pl.BlockSpec((C, Ch), lambda b: (0, 0)),
                pl.BlockSpec((Ch, C), lambda b: (0, 0)),
            ],
            out_specs=pl.BlockSpec((bt, C, HWp), lambda b: (b, 0, 0)),
        ),
        compiler_params=pltpu.CompilerParams(
            dimension_semantics=("parallel",),
            vmem_limit_bytes=vmem_limit,
        ),
    )(x3, w1t, w2t)

    if HWp != HW:
        out3 = out3[:, :, :HW]
    return out3.reshape(B, C, H, W)


def channel_attention_ref(x, w1, w2):
    """Pure-JAX reference matching the PyTorch forward."""
    avg = jnp.mean(x, axis=(2, 3))  # (B, C)
    mx = jnp.max(x, axis=(2, 3))    # (B, C)

    def mlp(v):
        h = jnp.maximum(v @ w1.T, 0.0)
        return h @ w2.T

    scale = jax.nn.sigmoid(mlp(avg) + mlp(mx))[:, :, None, None]
    return x * scale


if __name__ == "__main__":
    # Small shapes consistent with the module: ratio=16 -> C must be >= 16.
    B, C, H, W = 2, 64, 8, 8
    ratio = 16
    Ch = C // ratio

    key = jax.random.PRNGKey(0)
    kx, k1, k2 = jax.random.split(key, 3)

    x = jax.random.normal(kx, (B, C, H, W), dtype=jnp.float32)
    # Deterministic synthetic weights (PyTorch Linear layout: (out, in)).
    w1 = jax.random.normal(k1, (Ch, C), dtype=jnp.float32) * (1.0 / jnp.sqrt(C))
    w2 = jax.random.normal(k2, (C, Ch), dtype=jnp.float32) * (1.0 / jnp.sqrt(Ch))

    out = jax.block_until_ready(channel_attention(x, w1, w2))
    ref = jax.block_until_ready(channel_attention_ref(x, w1, w2))

    assert out.shape == (B, C, H, W)
    assert jnp.allclose(out, ref, atol=1e-5, rtol=1e-5), "mismatch vs reference"
    print("KERNEL_OK")
</pallas_src>

<mosaic_0001>
module attributes {stable_mosaic.version = 11 : i64} {
  func.func @channel_attention_kernel(%arg0: i32, %arg1: memref<1x64x128xf32, #tpu.memory_space<vmem>>, %arg2: memref<64x4xf32, #tpu.memory_space<vmem>>, %arg3: memref<4x64xf32, #tpu.memory_space<vmem>>, %arg4: memref<1x64x128xf32, #tpu.memory_space<vmem>>) attributes {dimension_semantics = [#tpu.dimension_semantics<parallel>], iteration_bounds = array<i64: 2>, scalar_prefetch = 0 : i64, scratch_operands = 0 : i64, tpu.core_type = #tpu.core_type<tc>, window_params = [{transform_indices = @transform_0, window_bounds = array<i64: 1, 64, 128>}, {pipeline_mode = #tpu.pipeline_mode<synchronous>, transform_indices = @transform_1, window_bounds = array<i64: 64, 4>}, {pipeline_mode = #tpu.pipeline_mode<synchronous>, transform_indices = @transform_2, window_bounds = array<i64: 4, 64>}, {transform_indices = @transform_3, window_bounds = array<i64: 1, 64, 128>}]} {
    %c0 = arith.constant 0 : index
    %c0_0 = arith.constant 0 : index
    %c0_1 = arith.constant 0 : index
    %0 = vector.load %arg1[%c0, %c0_0, %c0_1] : memref<1x64x128xf32, #tpu.memory_space<vmem>>, vector<1x64x128xf32>
    %cst = arith.constant dense<0.000000e+00> : vector<1x64xf32>
    %1 = vector.multi_reduction <add>, %0, %cst [2] : vector<1x64x128xf32> to vector<1x64xf32>
    %cst_2 = arith.constant 1.562500e-02 : f32
    %2 = vector.broadcast %cst_2 : f32 to vector<1x64xf32>
    %3 = arith.mulf %1, %2 : vector<1x64xf32>
    %4 = tpu.iota {dimensions = array<i32: 2>} : vector<1x64x128xi32>
    %c64_i32 = arith.constant 64 : i32
    %5 = vector.broadcast %c64_i32 : i32 to vector<1x64x128xi32>
    %6 = arith.cmpi slt, %4, %5 : vector<1x64x128xi32>
    %cst_3 = arith.constant 0xFF800000 : f32
    %7 = vector.broadcast %cst_3 : f32 to vector<1x64x128xf32>
    %8 = arith.select %6, %0, %7 : vector<1x64x128xi1>, vector<1x64x128xf32>
    %cst_4 = arith.constant dense<0xFF800000> : vector<1x64xf32>
    %9 = vector.multi_reduction <maximumf>, %8, %cst_4 [2] : vector<1x64x128xf32> to vector<1x64xf32>
    %c0_5 = arith.constant 0 : index
    %c0_6 = arith.constant 0 : index
    %10 = vector.load %arg2[%c0_5, %c0_6] : memref<64x4xf32, #tpu.memory_space<vmem>>, vector<64x4xf32>
    %c0_7 = arith.constant 0 : index
    %c0_8 = arith.constant 0 : index
    %11 = vector.load %arg3[%c0_7, %c0_8] : memref<4x64xf32, #tpu.memory_space<vmem>>, vector<4x64xf32>
    %cst_9 = arith.constant dense<0.000000e+00> : vector<1x4xf32>
    %12 = tpu.matmul %3, %10, %cst_9 {dimension_numbers = #tpu.dot_dimension_numbers<[1], [0], [0], [1], [0, 0, 1, 1], [], []>} : vector<1x64xf32>, vector<64x4xf32>, vector<1x4xf32> -> vector<1x4xf32>
    %cst_10 = arith.constant 0.000000e+00 : f32
    %13 = vector.broadcast %cst_10 : f32 to vector<1x4xf32>
    %14 = arith.maximumf %12, %13 : vector<1x4xf32>
    %cst_11 = arith.constant dense<0.000000e+00> : vector<1x64xf32>
    %15 = tpu.matmul %14, %11, %cst_11 {dimension_numbers = #tpu.dot_dimension_numbers<[1], [0], [0], [1], [0, 0, 1, 1], [], []>} : vector<1x4xf32>, vector<4x64xf32>, vector<1x64xf32> -> vector<1x64xf32>
    %cst_12 = arith.constant dense<0.000000e+00> : vector<1x4xf32>
    %16 = tpu.matmul %9, %10, %cst_12 {dimension_numbers = #tpu.dot_dimension_numbers<[1], [0], [0], [1], [0, 0, 1, 1], [], []>} : vector<1x64xf32>, vector<64x4xf32>, vector<1x4xf32> -> vector<1x4xf32>
    %cst_13 = arith.constant 0.000000e+00 : f32
    %17 = vector.broadcast %cst_13 : f32 to vector<1x4xf32>
    %18 = arith.maximumf %16, %17 : vector<1x4xf32>
    %cst_14 = arith.constant dense<0.000000e+00> : vector<1x64xf32>
    %19 = tpu.matmul %18, %11, %cst_14 {dimension_numbers = #tpu.dot_dimension_numbers<[1], [0], [0], [1], [0, 0, 1, 1], [], []>} : vector<1x4xf32>, vector<4x64xf32>, vector<1x64xf32> -> vector<1x64xf32>
    %20 = arith.addf %15, %19 : vector<1x64xf32>
    %21 = arith.negf %20 : vector<1x64xf32>
    %22 = math.exp %21 : vector<1x64xf32>
    %cst_15 = arith.constant 1.000000e+00 : f32
    %23 = vector.broadcast %cst_15 : f32 to vector<1x64xf32>
    %24 = arith.addf %23, %22 : vector<1x64xf32>
    %25 = arith.divf %23, %24 : vector<1x64xf32>
    %c0_16 = arith.constant 0 : index
    %c0_17 = arith.constant 0 : index
    %c0_18 = arith.constant 0 : index
    %26 = vector.load %arg1[%c0_16, %c0_17, %c0_18] : memref<1x64x128xf32, #tpu.memory_space<vmem>>, vector<1x64x128xf32>
    %27 = vector.shape_cast %25 : vector<1x64xf32> to vector<1x64x1xf32>
    %28 = vector.broadcast %27 : vector<1x64x1xf32> to vector<1x64x128xf32>
    %29 = arith.mulf %26, %28 : vector<1x64x128xf32>
    %c0_19 = arith.constant 0 : index
    %c0_20 = arith.constant 0 : index
    %c0_21 = arith.constant 0 : index
    %30 = vector.load %arg4[%c0_19, %c0_20, %c0_21] : memref<1x64x128xf32, #tpu.memory_space<vmem>>, vector<1x64x128xf32>
    tpu.vector_store %arg4[%c0_19, %c0_20, %c0_21], %29 {strides = array<i32>} : memref<1x64x128xf32, #tpu.memory_space<vmem>>, vector<1x64x128xf32>,
    return
  }
  func.func @transform_0(%arg0: i32) -> (i32, i32, i32) {
    %c0_i32 = arith.constant 0 : i32
    %c0_i32_0 = arith.constant 0 : i32
    %c0_i32_1 = arith.constant 0 : i32
    return %arg0, %c0_i32, %c0_i32_0 : i32, i32, i32
  }
  func.func @transform_1(%arg0: i32) -> (i32, i32) {
    %c0_i32 = arith.constant 0 : i32
    %c0_i32_0 = arith.constant 0 : i32
    %c0_i32_1 = arith.constant 0 : i32
    return %c0_i32, %c0_i32_0 : i32, i32
  }
  func.func @transform_2(%arg0: i32) -> (i32, i32) {
    %c0_i32 = arith.constant 0 : i32
    %c0_i32_0 = arith.constant 0 : i32
    %c0_i32_1 = arith.constant 0 : i32
    return %c0_i32, %c0_i32_0 : i32, i32
  }
  func.func @transform_3(%arg0: i32) -> (i32, i32, i32) {
    %c0_i32 = arith.constant 0 : i32
    %c0_i32_0 = arith.constant 0 : i32
    %c0_i32_1 = arith.constant 0 : i32
    return %arg0, %c0_i32, %c0_i32_0 : i32, i32, i32
  }
}

</mosaic_0001>

<bundles_post_ra>
// kernel: tpu_custom_call.1
= control target key start
LH: loop header
LB: loop body
LE: loop exit
PB: predicated region body
PF: predicated region fallthrough
CT: control target
= control target key end

     0   :  { %8 = vsyncpa [#allocation3], 0  ;;  %s1416_s0 = inlined_call_operand.hbm [shape: f32[2,64,128], index: 0, kind: input, shape index: {}]   ;;  %s1417_s1 = inlined_call_operand.vmem [shape: f32[64,4], index: 1, kind: input, shape index: {}]   ;;  %s1418_s2 = inlined_call_operand.vmem [shape: f32[4,64], index: 2, kind: input, shape index: {}]   ;;  %s1419_s3 = inlined_call_operand.hbm [shape: f32[2,64,128], index: 3, kind: output, shape index: {}]  }
   0x1   :  { %10 = vsyncpa [#allocation3 + $0x1], 0 }
   0x2   :  { %11 = vsyncpa [#allocation4], 0 }
   0x3   :  { %13 = vsyncpa [#allocation4 + $0x1], 0  ;;  %s1109_s12 = smov 0   ;;  %s1111_s13 = smov 0  }
   0x4   :  { %s1113_s14 = smov 0   ;;  %s1115_s15 = smov 0  }
   0x5 LB: > { %s1130_s16 = sadd.s32 4294967295, %s1078_s15   ;;  %s807_s17 = sadd.s32 4294967294, %s1078_s15   ;;  %s1078_s15 = sphi %s1115_s15, %s1432_s15   ;;  %s1074_s14 = sphi %s1113_s14, %s1431_s14   ;;  %s1070_s13 = sphi %s1111_s13, %s1430_s13   ;;  %s1066_s12 = sphi %s1109_s12, %s1429_s12  }
   0x6   : > { %s1134_s18 = sadd.s32 1, %s1078_s15   ;;  %s26_s19 = sadd.s32 1, %s1074_s14 }
   0x7   : > { %s23_s20 = ssub.s32 %s1078_s15, %s1134_s18  ;;  %p33_p0 = scmp.ne.s32.totalorder %s1074_s14, %s1070_s13 }
   0x8   : > { %p24_p1 = scmp.eq.s32.totalorder %s23_s20, 0  ;;  %p34_p2 = scmp.eq.s32.totalorder %s1078_s15, 0 }
   0x9   : > { %p39_p3 = scmp.ne.s32.totalorder %s1070_s13, %s1066_s12  ;;  %p40_p4 = scmp.eq.s32.totalorder %s1130_s16, 0 }
   0xa   : > { %s1146_s21 = scalar_select %p24_p1, %s1074_s14, %s26_s19  }
   0xb   : > { %p1148_p5 = por %p34_p2, %p33_p0  ;;  %p1152_p6 = por %p40_p4, %p39_p3 }
   0xc   : > { %p105_p7 = scmp.eq.s32.totalorder %s1130_s16, 1  ;;  %p111_p8 = scmp.eq.s32.totalorder %s807_s17, 1 }
   0xd   : > { %p937_p10 = scmp.lt.s32.totalorder %s1078_s15, 2  ;;  %s137_s26 = sand.u32 1, %s1074_s14  }
   0xe   : > { %p1159_p11 = por %p105_p7, %p33_p0  ;;  %p1163_p12 = por %p111_p8, %p39_p3 }
   0xf   : > { %s828_s27 = sshll.u32 %s1078_s15, 10  ;;  %s810_s28 = sshll.u32 %s137_s26, 6 }
  0x10   : > { %s1423_s24 = scalar_select %p1159_p11, 1, 0 }
  0x11   : > { %s1424_s25 = scalar_select %p1163_p12, 1, 0 }
  0x12   : > { %s1172_s4 = scalar_lea.hbm %s1416_s0, %s828_s27  ;;  %s141_s5 = scalar_lea.vmem [#allocation2], %s810_s28 }
  0x13   : > { %s148_s6 = sshll.u32 %s141_s5, 4  ;;  %p1176_p13 = pnand %p937_p10, %p1148_p5  ;;  %s1180_s6 = int_to_ptr.vmem [resolvable:$true] %s148_s6 }
  0x14   : > { %s1182_s8 = scalar_lea.sflag [#allocation3], %s137_s26  ;;  %s982_s9 = scalar_lea.hbm %s1172_s4, 1024 }
  0x15   : > { %p983_p0 = scmp.ne.s32.totalorder %s1172_s4, %s982_s9  ;;  %p984_p1 = pneg %p1176_p13 }
  0x16   : > { %s987_s17 = scalar_lea.hbm %s1416_s0, 2048  ;;  %p988_p4 = scmp.lt.u32.totalorder %s1172_s4, %s1416_s0 }
  0x17   : > { %p985_p2 = pnand %p984_p1, %p983_p0  ;;  %p989_p5 = scmp.lt.u32.totalorder %s987_s17, %s982_s9 }
  0x18   : > { %p991_p8 = scmp.lt.u32.totalorder %s982_s9, %s1172_s4 }
  0x19   : > { %p986_p3 = pneg %p985_p2  ;;  %p990_p7 = por %p989_p5, %p988_p4 }
  0x1b   : > { %p992_p10 = por %p991_p8, %p990_p7 }
  0x1d   : > { %p993_p9 = pnand %p992_p10, %p986_p3 }
  0x1f   : > { %996 = shalt.err (!%p993_p9)
}
  0x20   : > { %s997_s22 = scalar_lea.vmem %s1180_s6, 1024  ;;  %s1080_s26 = smov [#allocation2]  }
  0x21   : > { %p998_p0 = scmp.ne.s32.totalorder %s1180_s6, %s997_s22  ;;  %s1002_s27 = sshll.u32 %s1080_s26, 4  ;;  %s1003_s27 = int_to_ptr.vmem [resolvable:$false] %s1002_s27 }
  0x22   : > { %s1004_s28 = scalar_lea.vmem %s1003_s27, 2048  ;;  %p1005_p11 = scmp.lt.s32.totalorder %s1180_s6, %s1003_s27 }
  0x23   : > { %p1000_p2 = pnand %p998_p0, %p984_p1  ;;  %p1006_p4 = scmp.lt.s32.totalorder %s1004_s28, %s997_s22 }
  0x25   : > { %p1001_p12 = pneg %p1000_p2  ;;  %p1007_p5 = por %p1006_p4, %p1005_p11 }
  0x27   : > { %p1008_p7 = pnand %p1007_p5, %p1001_p12 }
  0x29   : > { %1011 = shalt.err (!%p1008_p7)
}
  0x2a   : > { %s1081_s29 = smov 128   ;;  %s1082_s30 = smov 8  }
  0x2b   : > { %932 = dma.hbm_to_vmem [thread:$0]  (!%p1176_p13), %s1172_s4, 1024, %s1180_s6, %s1182_s8, %s1081_s29, %s1081_s29, %s1082_s30  }
  0x2c   : > { %p813_p9 = scmp.ge.s32.totalorder %s1078_s15, 1  ;;  %p156_p1 = scmp.lt.s32.totalorder %s1078_s15, 3 }
  0x2e   : > { %p157_p3 = pnand %p813_p9, %p156_p1 }
  0x2f   : > { %s1213_s5 = sand.u32 (!%p157_p3), 1, %s1070_s13  }
  0x30   : > { %160 = sbr.rel (%p157_p3) target bundleno = 835 (0x343), region = 32  ;;  %s814_s9 = sshll.u32 (!%p157_p3), %s1213_s5, 6 }
  0x31   : > { %s163_s10 = scalar_lea.sflag (!%p157_p3), [#allocation3], %s1213_s5  ;;  %s1219_s11 = scalar_lea.vmem (!%p157_p3), [#allocation2], %s814_s9 }
  0x37   : > { %1057 = dma.done.wait (%p1152_p6), %s163_s10, 1024  }
  0x38   : > { %1059 = vsyncadd (%p1152_p6), %s163_s10, 4294966272  ;;  %v221_v0 = vlaneseq  ;;  %v1229_v2 = vld [vmem:[%s1219_s11 + $0x10] sm:$0xff]  ;;  %v1232_v3 = vld [vmem:[%s1219_s11] sm:$0xff]  ;;  %v1083_v21 = vmov 0.0|0.0   ;;  %vm1084_vm1 = vmmov 0   ;;  %v1085_v31 = vmov 0.0  }
  0x39   : > { %201 = vadd.xlane.f32.xlu1 %v1229_v2  ;;  %197 = vadd.xlane.f32.xlu0 %v1232_v3  ;;  %v1237_v4 = vld [vmem:[%s1219_s11 + $0x18] sm:$0xff]  ;;  %v1240_v5 = vld [vmem:[%s1219_s11 + $0x8] sm:$0xff]  ;;  %v1255_v9 = vld [vmem:[%s1219_s11 + $0x20] sm:$0xff]  ;;  %vm274_vm2 = vcmask 130112   ;;  %vm281_vm3 = vcmask 195712   ;;  %vm288_vm4 = vcmask 261312  }
  0x3a   : > { %v1226_v1 = vand.u32 127, %v221_v0  ;;  %v1262_v11 = vld [vmem:[%s1219_s11 + $0x28] sm:$0xff]  ;;  %v1269_v13 = vld [vmem:[%s1219_s11 + $0x30] sm:$0xff]  ;;  %v1276_v15 = vld [vmem:[%s1219_s11 + $0x38] sm:$0xff]  ;;  %900 = vmatprep.subr.bf16.mxu0 %v1083_v21  ;;  %912 = vmatprep.subr.bf16.mxu1 %v1083_v21  ;;  %v1317_v39 = vshrl.u32 %v221_v0, 7  ;;  %vm295_vm5 = vcmask 326912  }
  0x3b   : > { %v248_v18 = vld [vmem:[%s1417_s1] sm:$0xff]  ;;  %v249_v19 = vld [vmem:[%s1417_s1 + $0x8] sm:$0xff]  ;;  %v250_v22 = vld [vmem:[%s1417_s1 + $0x10] sm:$0xff]  ;;  %868 = vmatprep.mubr.msk.f32.mxu0 %vm1084_vm1, %v1085_v31  ;;  %887 = vmatprep.mubr.msk.f32.mxu1 %vm1084_vm1, %v1085_v31  ;;  %vm302_vm6 = vcmask 392512   ;;  %vm309_vm7 = vcmask 458112   ;;  %vm316_vm8 = vcmask 523712  }
  0x3c   : > { %vm223_vm0 = vcmp.lt.s32.totalorder %v1226_v1, 64  ;;  %v901_v20 = vpack.c.bf16 %v249_v19, %v248_v18  ;;  %v251_v23 = vld [vmem:[%s1417_s1 + $0x18] sm:$0xff]  ;;  %v252_v25 = vld [vmem:[%s1417_s1 + $0x20] sm:$0xff]  ;;  %v253_v26 = vld [vmem:[%s1417_s1 + $0x28] sm:$0xff]  ;;  %v269_v36 = vadd.s32 4294967288, %v1226_v1  ;;  %v276_v42 = vadd.s32 4294967280, %v1226_v1 }
  0x3d   : > { %203 = vadd.xlane.f32.xlu1 %v1237_v4  ;;  %199 = vadd.xlane.f32.xlu0 %v1240_v5  ;;  %v225_v6 = vsel %vm223_vm0, %v1240_v5, -inf  ;;  %v224_v7 = vsel %vm223_vm0, %v1232_v3, -inf  ;;  %v226_v8 = vsel %vm223_vm0, %v1229_v2, -inf  ;;  %v227_v10 = vsel %vm223_vm0, %v1237_v4, -inf  ;;  %v254_v28 = vld [vmem:[%s1417_s1 + $0x30] sm:$0xff]  ;;  %v255_v29 = vld [vmem:[%s1417_s1 + $0x38] sm:$0xff] }
  0x3e   : > { %v228_v12 = vsel %vm223_vm0, %v1255_v9, -inf  ;;  %v229_v14 = vsel %vm223_vm0, %v1262_v11, -inf  ;;  %v230_v16 = vsel %vm223_vm0, %v1269_v13, -inf  ;;  %v231_v17 = vsel %vm223_vm0, %v1276_v15, -inf  ;;  %902 = vmatpush3.bf16.msra.mxu0 %v901_v20  ;;  %914 = vmatpush3.bf16.msra.mxu1 %v901_v20  ;;  %s188_s6 = scalar_lea.vmem [#allocation5], %s814_s9  ;;  %s829_s7 = sshll.u32 %s1130_s16, 10 }
  0x3f   : > { %903 = vmatprep.subr.bf16.mxu0 %v1083_v21  ;;  %v904_v24 = vpack.c.bf16 %v251_v23, %v250_v22  ;;  %915 = vmatprep.subr.bf16.mxu1 %v1083_v21  ;;  %v907_v27 = vpack.c.bf16 %v253_v26, %v252_v25  ;;  %v910_v30 = vpack.c.bf16 %v255_v29, %v254_v28  ;;  %v283_v47 = vadd.s32 4294967272, %v1226_v1  ;;  %s734_s9 = sshll.u32 %s188_s6, 4  ;;  %s1371_s19 = scalar_lea.hbm %s1419_s3, %s829_s7  ;;  %s1366_s9 = int_to_ptr.vmem [resolvable:$true] %s734_s9 }
  0x40   : > { %v272_v40 = vsub.s32 %v269_v36, %v1317_v39  ;;  %v267_v45 = vsub.s32 %v1226_v1, %v1317_v39  ;;  %v290_v48 = vadd.s32 4294967264, %v1226_v1  ;;  %v297_v50 = vadd.s32 4294967256, %v1226_v1  ;;  %s721_s20 = scalar_lea.sflag [#allocation4], %s1213_s5  ;;  %s1012_s22 = scalar_lea.vmem %s1366_s9, 1024 }
  0x41   : > { %234 = vmax.xlane.f32.xlu1 %v225_v6  ;;  %232 = vmax.xlane.f32.xlu0 %v224_v7  ;;  %v279_v51 = vsub.s32 %v276_v42, %v1317_v39  ;;  %v304_v55 = vadd.s32 4294967248, %v1226_v1  ;;  %v286_v57 = vsub.s32 %v283_v47, %v1317_v39  ;;  %v311_v0 = vadd.s32 4294967240, %v1226_v1  ;;  %p1013_p6 = scmp.ne.s32.totalorder %s1366_s9, %s1012_s22  ;;  %p1426_p11 = scmp.ne.s32.totalorder %s1423_s24, 0 }
  0x42   : > { %905 = vmatpush3.bf16.msra.mxu0 %v904_v24  ;;  %917 = vmatpush3.bf16.msra.mxu1 %v904_v24  ;;  %v293_v59 = vsub.s32 %v290_v48, %v1317_v39  ;;  %v300_v62 = vsub.s32 %v297_v50, %v1317_v39  ;;  %vm318_vm9 = vcmask 523264   ;;  %v256_v48 = vld [vmem:[%s1418_s2] sm:$0xf]  ;;  %vm516_vm10 = vcmask 1043456   ;;  %s1086_s16 = smov [#allocation5]  }
  0x43   : > { %906 = vmatprep.subr.bf16.mxu0 %v1083_v21  ;;  %918 = vmatprep.subr.bf16.mxu1 %v1083_v21  ;;  %v314_v22 = vsub.s32 %v311_v0, %v1317_v39  ;;  %vm512_vm11 = vcmask 31744   ;;  %p1014_p12 = pnand %p1013_p6, %p1426_p11  ;;  %s1016_s26 = sshll.u32 %s1086_s16, 4  ;;  %s1017_s26 = int_to_ptr.vmem [resolvable:$false] %s1016_s26 }
  0x44   : > { %s1018_s27 = scalar_lea.vmem %s1017_s26, 2048  ;;  %p1019_p8 = scmp.lt.s32.totalorder %s1366_s9, %s1017_s26 }
  0x45   : > { %236 = vmax.xlane.f32.xlu1 %v226_v8  ;;  %205 = vadd.xlane.f32.xlu0 %v1255_v9  ;;  %v307_v8 = vsub.s32 %v304_v55, %v1317_v39  ;;  %p1015_p13 = pneg %p1014_p12  ;;  %p1020_p10 = scmp.lt.s32.totalorder %s1018_s27, %s1012_s22 }
  0x46   : > { %908 = vmatpush3.bf16.msra.mxu0 %v907_v27  ;;  %920 = vmatpush3.bf16.msra.mxu1 %v907_v27 }
  0x47   : > { %909 = vmatprep.subr.bf16.mxu0 %v1083_v21  ;;  %921 = vmatprep.subr.bf16.mxu1 %v1083_v21  ;;  %p1021_p0 = por %p1020_p10, %p1019_p8 }
  0x49   : > { %238 = vmax.xlane.f32.xlu1 %v227_v10  ;;  %207 = vadd.xlane.f32.xlu0 %v1262_v11  ;;  %p1022_p2 = pnand %p1021_p0, %p1015_p13 }
  0x4a   : > { %911 = vmatpush3.bf16.msra.mxu0 %v910_v30  ;;  %923 = vmatpush3.bf16.msra.mxu1 %v910_v30 }
  0x4b   : > { %890 = vmatprep.subr.mxu1 %v1085_v31  ;;  %895 = vmatprep.subr.mxu0 %v1085_v31 }
  0x4d   : > { %240 = vmax.xlane.f32.xlu1 %v228_v12  ;;  %209 = vadd.xlane.f32.xlu0 %v1269_v13 }
  0x51   : > { %242 = vmax.xlane.f32.xlu1 %v229_v14  ;;  %211 = vadd.xlane.f32.xlu0 %v1276_v15 }
  0x55   : > { %244 = vmax.xlane.f32.xlu0 %v230_v16  ;;  %246 = vmax.xlane.f32.xlu1 %v231_v17 }
  0xc6   : > { %v202_v32 = vpop.xlane.xlu1 %201  ;;  %v198_v33 = vpop.xlane.xlu0 %197 }
  0xc7   : > { %v213_v46 = vmul.f32 0.015625, %v198_v33  ;;  %v215_v52 = vmul.f32 0.015625, %v202_v32 }
  0xc9   : > { %v268_v56 = vrot.slane %v213_v46, %v267_v45  ;;  %v280_v6 = vrot.slane %v215_v52, %v279_v51 }
  0xca   : > { %v204_v34 = vpop.xlane.xlu1 %203  ;;  %v200_v35 = vpop.xlane.xlu0 %199 }
  0xcb   : > { %v214_v41 = vmul.f32 0.015625, %v200_v35  ;;  %v216_v58 = vmul.f32 0.015625, %v204_v34 }
  0xcd   : > { %v273_v49 = vrot.slane %v214_v41, %v272_v40  ;;  %v287_v12 = vrot.slane %v216_v58, %v286_v57 }
  0xce   : > { %v235_v37 = vpop.xlane.xlu1 %234  ;;  %v233_v38 = vpop.xlane.xlu0 %232 }
  0xcf   : > { %v275_v61 = vsel %vm274_vm2, %v273_v49, %v268_v56  ;;  %v407_v16 = vrot.slane %v235_v37, %v272_v40  ;;  %v403_v17 = vrot.slane %v233_v38, %v267_v45 }
  0xd0   : > { %v282_v18 = vsel %vm281_vm3, %v280_v6, %v275_v61 }
  0xd1   : > { %v289_v26 = vsel %vm288_vm4, %v287_v12, %v282_v18  ;;  %v408_v29 = vsel %vm274_vm2, %v407_v16, %v403_v17 }
  0xd2   : > { %v237_v43 = vpop.xlane.xlu1 %236  ;;  %v206_v44 = vpop.xlane.xlu0 %205 }
  0xd3   : > { %v217_v60 = vmul.f32 0.015625, %v206_v44  ;;  %v412_v20 = vrot.slane %v237_v43, %v279_v51 }
  0xd5   : > { %v294_v19 = vrot.slane %v217_v60, %v293_v59  ;;  %v413_v33 = vsel %vm281_vm3, %v412_v20, %v408_v29 }
  0xd6   : > { %v239_v53 = vpop.xlane.xlu1 %238  ;;  %v208_v54 = vpop.xlane.xlu0 %207 }
  0xd7   : > { %v218_v63 = vmul.f32 0.015625, %v208_v54  ;;  %v417_v23 = vrot.slane %v239_v53, %v286_v57  ;;  %v296_v30 = vsel %vm295_vm5, %v294_v19, %v289_v26 }
  0xd9   : > { %v301_v21 = vrot.slane %v218_v63, %v300_v62  ;;  %v418_v36 = vsel %vm288_vm4, %v417_v23, %v413_v33 }
  0xda   : > { %v241_v7 = vpop.xlane.xlu1 %240  ;;  %v210_v10 = vpop.xlane.xlu0 %209 }
  0xdb   : > { %v219_v14 = vmul.f32 0.015625, %v210_v10  ;;  %v422_v27 = vrot.slane %v241_v7, %v293_v59  ;;  %v303_v34 = vsel %vm302_vm6, %v301_v21, %v296_v30 }
  0xdd   : > { %v308_v1 = vrot.slane %v219_v14, %v307_v8  ;;  %v423_v41 = vsel %vm295_vm5, %v422_v27, %v418_v36 }
  0xde   : > { %v243_v24 = vpop.xlane.xlu1 %242  ;;  %v212_v25 = vpop.xlane.xlu0 %211 }
  0xdf   : > { %v220_v28 = vmul.f32 0.015625, %v212_v25  ;;  %v427_v32 = vrot.slane %v243_v24, %v300_v62  ;;  %v310_v40 = vsel %vm309_vm7, %v308_v1, %v303_v34  ;;  %v671_v62 = vsub.s32 0, %v1317_v39 }
  0xe1   : > { %v315_v35 = vrot.slane %v220_v28, %v314_v22  ;;  %v428_v45 = vsel %vm302_vm6, %v427_v32, %v423_v41 }
  0xe2   : > { %v245_v37 = vpop.xlane.xlu0 %244  ;;  %v247_v38 = vpop.xlane.xlu1 %246 }
  0xe3   : > { %v432_v42 = vrot.slane %v245_v37, %v307_v8  ;;  %v437_v43 = vrot.slane %v247_v38, %v314_v22  ;;  %v317_v44 = vsel %vm316_vm8, %v315_v35, %v310_v40 }
  0xe4   : > { %869 = vmatmul.mubr.msk.f32.vlgmr.msra.gmra.mrb[0].mxu0 %vm318_vm9, %v317_v44 }
  0xe5   : > { %v433_v46 = vsel %vm309_vm7, %v432_v42, %v428_v45  ;;  %897 = vmatprep.mubr.msk.f32.mxu0 %vm1084_vm1, %v1085_v31  ;;  %896 = vmatpush3.msk.msra.mxu0 %vm516_vm10, %v256_v48 }
  0xe6   : > { %v438_v47 = vsel %vm316_vm8, %v437_v43, %v433_v46 }
  0xe7   : > { %888 = vmatmul.mubr.msk.f32.vlgmr.msra.gmra.mrb[0].mxu1 %vm318_vm9, %v438_v47 }
  0xe8   : > { %892 = vmatprep.mubr.msk.f32.mxu1 %vm1084_vm1, %v1085_v31  ;;  %891 = vmatpush3.msk.msra.mxu1 %vm516_vm10, %v256_v48 }
 0x1b7   : > { %v387_v49 = vpop.f32.mrb[0].mxu0 }
 0x1b8   : > { %v391_v50 = vmax.f32 %v387_v49, 0.0  ;;  %v870_v51 = vpop.f32.mrb[1].mxu0 }
 0x1ba   : > { %v507_v52 = vpop.f32.mrb[0].mxu1  ;;  %898 = vmatmul.mubr.msk.f32.vlgmr.msra.gmra.mrb[2].mxu0 %vm512_vm11, %v391_v50 }
 0x1bb   : > { %v511_v53 = vmax.f32 %v507_v52, 0.0  ;;  %v889_v54 = vpop.f32.mrb[1].mxu1 }
 0x1bd   : > { %893 = vmatmul.mubr.msk.f32.vlgmr.msra.gmra.mrb[2].mxu1 %vm512_vm11, %v511_v53 }
 0x28d   : > { %v659_v55 = vpop.f32.mrb[2].mxu0 }
 0x28e   : > { %v899_v56 = vpop.f32.mrb[3].mxu0 }
 0x290   : > { %v586_v57 = vpop.f32.mrb[2].mxu1 }
 0x291   : > { %v660_v31 = vadd.f32 %v659_v55, %v586_v57  ;;  %v894_v58 = vpop.f32.mrb[3].mxu1 }
 0x293   : > { %v822_v59 = vmul.f32 -1.442695, %v660_v31 }
 0x295   : > { %978 = vpow2.f32 %v822_v59 }
 0x29f   : > { %v979_v60 = vpop.eup %978 }
 0x2a0   : > { %v666_v61 = vadd.f32 1.0, %v979_v60 }
 0x2a2   : > { %980 = vrcp.f32 %v666_v61 }
 0x2ac   : > { %v981_v63 = vpop.eup %980 }
 0x2ad   : > { %v672_v0 = vrot.slane %v981_v63, %v671_v62 }
 0x2af   : > { %678 = vbcast.lane.b32.xlu1 %v672_v0, 264  ;;  %674 = vbcast.lane.b32.xlu0 %v672_v0, 256 }
 0x2b3   : > { %682 = vbcast.lane.b32.xlu1 %v672_v0, 272  ;;  %690 = vbcast.lane.b32.xlu0 %v672_v0, 288 }
 0x2b7   : > { %686 = vbcast.lane.b32.xlu1 %v672_v0, 280  ;;  %698 = vbcast.lane.b32.xlu0 %v672_v0, 304 }
 0x2bb   : > { %694 = vbcast.lane.b32.xlu1 %v672_v0, 296 }
 0x2bf   : > { %702 = vbcast.lane.b32.xlu1 %v672_v0, 312 }
 0x321   : > { %v679_v6 = vpop.permute.xlu1 %678  ;;  %v675_v7 = vpop.permute.xlu0 %674 }
 0x322   : > { %v705_v8 = vmul.f32 %v679_v6, %v1240_v5  ;;  %v704_v10 = vmul.f32 %v675_v7, %v1232_v3 }
 0x324   : > { %713 = vst [vmem:[%s188_s6 + $0x8] sm:$0xff] %v705_v8  ;;  %712 = vst [vmem:[%s188_s6] sm:$0xff] %v704_v10 }
 0x325   : > { %v683_v39 = vpop.permute.xlu1 %682  ;;  %v691_v12 = vpop.permute.xlu0 %690 }
 0x326   : > { %v706_v14 = vmul.f32 %v683_v39, %v1229_v2  ;;  %v708_v16 = vmul.f32 %v691_v12, %v1255_v9 }
 0x328   : > { %714 = vst [vmem:[%s188_s6 + $0x10] sm:$0xff] %v706_v14  ;;  %716 = vst [vmem:[%s188_s6 + $0x20] sm:$0xff] %v708_v16 }
 0x329   : > { %v687_v17 = vpop.permute.xlu1 %686  ;;  %v699_v18 = vpop.permute.xlu0 %698 }
 0x32a   : > { %v707_v5 = vmul.f32 %v687_v17, %v1237_v4  ;;  %v710_v3 = vmul.f32 %v699_v18, %v1269_v13 }
 0x32c   : > { %715 = vst [vmem:[%s188_s6 + $0x18] sm:$0xff] %v707_v5  ;;  %718 = vst [vmem:[%s188_s6 + $0x30] sm:$0xff] %v710_v3 }
 0x32d   : > { %v695_v19 = vpop.permute.xlu1 %694 }
 0x32e   : > { %v709_v20 = vmul.f32 %v695_v19, %v1262_v11 }
 0x330   : > { %717 = vst [vmem:[%s188_s6 + $0x28] sm:$0xff] %v709_v20 }
 0x331   : > { %v703_v2 = vpop.permute.xlu1 %702 }
 0x332   : > { %v711_v4 = vmul.f32 %v703_v2, %v1276_v15 }
 0x334   : > { %719 = vst [vmem:[%s188_s6 + $0x38] sm:$0xff] %v711_v4 }
 0x335   : > { %1025 = shalt.err (!%p1022_p2)
}
 0x336   : > { %s1026_s28 = scalar_lea.hbm %s1371_s19, 1024  ;;  %s1030_s10 = scalar_lea.hbm %s1419_s3, 2048 }
 0x337   : > { %p1027_p4 = scmp.ne.s32.totalorder %s1371_s19, %s1026_s28  ;;  %p1031_p9 = scmp.lt.u32.totalorder %s1371_s19, %s1419_s3 }
 0x338   : > { %p1032_p1 = scmp.lt.u32.totalorder %s1030_s10, %s1026_s28  ;;  %p1034_p6 = scmp.lt.u32.totalorder %s1026_s28, %s1371_s19 }
 0x339   : > { %p1028_p5 = pnand %p1027_p4, %p1426_p11 }
 0x33a   : > { %p1033_p3 = por %p1032_p1, %p1031_p9 }
 0x33b   : > { %p1029_p7 = pneg %p1028_p5 }
 0x33c   : > { %p1035_p12 = por %p1034_p6, %p1033_p3 }
 0x33e   : > { %p1036_p13 = pnand %p1035_p12, %p1029_p7 }
 0x340   : > { %1039 = shalt.err (!%p1036_p13)
}
 0x341   : > { %s1087_s4 = smov 128   ;;  %s1088_s6 = smov 8  }
 0x342   : > { %927 = dma.vmem_to_hbm [thread:$0]  (%p1426_p11), %s1366_s9, 1024, %s1371_s19, %s721_s20, %s1087_s4, %s1087_s4, %s1088_s6  }
 0x343 PF: > { %s749_s7 = sand.u32 1, %s1066_s12   ;;  %p1427_p8 = scmp.ne.s32.totalorder %s1424_s25, 0 }
 0x344   : > { %p1428_p10 = scmp.ge.s32.totalorder %s1078_s15, 2  ;;  %s750_s8 = scalar_lea.sflag [#allocation4], %s749_s7 }
 0x346   : > { %p934_p0 = pnand %p1428_p10, %p1427_p8 }
 0x348   : > { %1061 = dma.done.wait (!%p934_p0), %s750_s8, 1024  }
 0x349   : > { %1063 = vsyncadd (!%p934_p0), %s750_s8, 4294966272  ;;  %p16_p2 = scmp.ge.s32.totalorder %s1134_s18, 4   ;;  %s1429_s12 = smov %s1070_s13 }
 0x34a   : > { %s1430_s13 = smov %s1074_s14  ;;  %s1431_s14 = smov %s1146_s21 }
 0x34b   : > { %s1432_s15 = smov %s1134_s18  ;;  %18 = sbr.rel (!%p16_p2) target bundleno = 5 (0x5), region = 77 }
 0x352   :  { %755 = vsyncpa [#allocation3], 1 }
 0x353   :  { %757 = vsyncpa [#allocation3 + $0x1], 1 }
 0x354   :  { %758 = vsyncpa [#allocation4], 1 }
 0x355   :  { %760 = vsyncpa [#allocation4 + $0x1], 1 }

</bundles_post_ra>
